<compile_context>
chip_gen: v5e
topology: v5e:2x2
jax: 0.10.0
libtpu: 0.0.40
codegen_flags: <defaults>
</compile_context>

<pallas_src>
import functools

import jax
import jax.numpy as jnp
from jax.experimental import pallas as pl
from jax.experimental.pallas import tpu as pltpu


# --------------------------------------------------------------------------
# Compiler params
# --------------------------------------------------------------------------
# Per-step working set is ~4-20 MiB with the tile heuristic below; 48 MiB of
# scoped VMEM leaves headroom on v5e/v6e (128 MiB) and stays under v7x (64 MiB).
_VMEM_LIMIT = 48 * 1024 * 1024
_CPARAMS_1D = pltpu.CompilerParams(dimension_semantics=("parallel",),
                                   vmem_limit_bytes=_VMEM_LIMIT)


# --------------------------------------------------------------------------
# Kernels
# --------------------------------------------------------------------------
def _pointwise_bn_relu_kernel(x_ref, w_ref, b_ref, o_ref):
    # x: (TM, Cin) bf16 ; w: (Cin, Cout) bf16 (BN scale folded) ; b: (1, Cout) f32
    # Cout=48 -> masked stores, but this tensor is small and consumed fused.
    o_ref[...] = jnp.maximum(
        jnp.dot(x_ref[...], w_ref[...], preferred_element_type=jnp.float32)
        + b_ref[...], 0.0).astype(o_ref.dtype)


def _conv3x3_kernel(*refs, th, W, cins, nc_pad, head):
    """3x3 conv (+folded BN +ReLU), optionally fused with the 1x1 classifier.

    refs layout:
      per input stream s: main_s (1, th, W+2, c_s), halo_s (1, 2, W+2, c_s)
      wk (3, 3*sum(c), Cout) bf16, b (1, Cout) f32
      [wh (Cout, nc_pad) bf16, bh (1, nc_pad) f32]       if head
      o  (1, th, W, Cout|nc_pad)
      scratch: fold (th+2, W, 3*sum(c)) bf16, acc (th*W, Cout) f32,
               [hbuf (th*W, Cout) bf16]                  if head
    """
    ns = len(cins)
    mains = [refs[2 * s] for s in range(ns)]
    halos = [refs[2 * s + 1] for s in range(ns)]
    idx = 2 * ns
    wk_ref, b_ref = refs[idx], refs[idx + 1]
    idx += 2
    if head:
        wh_ref, bh_ref = refs[idx], refs[idx + 1]
        idx += 2
    o_ref = refs[idx]
    fold_ref, acc_ref = refs[idx + 1], refs[idx + 2]
    if head:
        hbuf_ref = refs[idx + 3]

    # Build the kw-folded im2col slab in VMEM only (never hits HBM).
    # fold[j, w, base + kw*c + ch] = padded_input[row0 + j, w + kw, ch]
    base = 0
    for s in range(ns):
        c = cins[s]
        for kw in range(3):
            lo = base + kw * c
            fold_ref[0:th, :, lo:lo + c] = mains[s][0, :, kw:kw + W, :]
            fold_ref[th:th + 2, :, lo:lo + c] = halos[s][0, :, kw:kw + W, :]
        base += 3 * c

    K = base
    M = th * W
    # 3 big contractions (one per kh tap-row), K accumulated inside the MXU;
    # only 2 accumulator read-modify-writes, bias folded into the first dot.
    acc_ref[...] = (jnp.dot(fold_ref[0:th].reshape(M, K), wk_ref[0],
                            preferred_element_type=jnp.float32) + b_ref[...])
    acc_ref[...] += jnp.dot(fold_ref[1:th + 1].reshape(M, K), wk_ref[1],
                            preferred_element_type=jnp.float32)
    y = jnp.maximum(
        acc_ref[...] + jnp.dot(fold_ref[2:th + 2].reshape(M, K), wk_ref[2],
                               preferred_element_type=jnp.float32), 0.0)
    if head:
        # NOTE: activations are cast to bf16 before the classifier matmul
        # (extra quantization beyond plain bf16 matmul rounding; fine for
        # inference, covered by the relaxed test tolerance).
        hbuf_ref[...] = y.astype(jnp.bfloat16)
        logits = jnp.dot(hbuf_ref[...], wh_ref[...],
                         preferred_element_type=jnp.float32) + bh_ref[...]
        o_ref[0] = logits.reshape(th, W, nc_pad).astype(o_ref.dtype)
    else:
        o_ref[0] = y.reshape(th, W, y.shape[-1]).astype(o_ref.dtype)


# --------------------------------------------------------------------------
# Wrappers
# --------------------------------------------------------------------------
def _round_up(x, m):
    return (x + m - 1) // m * m


def _fold_bn(w_oihw, gamma, beta, mean, var, eps=1e-5):
    scale = gamma / jnp.sqrt(var + eps)
    return w_oihw * scale[:, None, None, None], beta - mean * scale


def _fold_w3x3(w_oihw):
    # OIHW -> (KH, KW*I, O) matching the kw-major fold-slab K layout.
    O, I, KH, KW = w_oihw.shape
    return jnp.transpose(w_oihw, (2, 3, 1, 0)).reshape(KH, KW * I, O)


def _pick_th(H, W, N, *, max_rows=2048, min_steps=4):
    """Rows per grid step = th*W; target 512-2048 rows, keep >= min_steps grid
    steps (megacore sharding + pipelining), th even and dividing H."""
    divs = [d for d in range(2, H + 1, 2) if H % d == 0]
    assert divs, f"H={H} must have an even divisor"
    fitting = [d for d in divs if d * W <= max_rows] or divs[:1]
    th = max(fitting)
    while N * (H // th) < min_steps:
        smaller = [d for d in fitting if d < th]
        if not smaller:
            break
        th = max(smaller)
    return th


def _pointwise_conv_bn_relu(x_nhwc, w_oihw, bias, *, tm=512):
    """1x1 conv + folded BN + ReLU as a row-tiled matmul kernel."""
    N, H, W, Cin = x_nhwc.shape
    Cout = w_oihw.shape[0]
    rows = N * H * W
    tm = min(tm, _round_up(rows, 8))
    xm = x_nhwc.reshape(rows, Cin)
    pad = (-rows) % tm
    if pad:
        xm = jnp.pad(xm, ((0, pad), (0, 0)))
    xm = xm.astype(jnp.bfloat16)
    wm = w_oihw[:, :, 0, 0].T.astype(jnp.bfloat16)            # (Cin, Cout)
    bm = bias.reshape(1, Cout).astype(jnp.float32)
    nt = xm.shape[0] // tm
    out = pl.pallas_call(
        _pointwise_bn_relu_kernel,
        out_shape=jax.ShapeDtypeStruct((xm.shape[0], Cout), jnp.bfloat16),
        grid_spec=pltpu.PrefetchScalarGridSpec(
            num_scalar_prefetch=0,
            grid=(nt,),
            in_specs=[
                pl.BlockSpec((tm, Cin), lambda i: (i, 0)),
                pl.BlockSpec((Cin, Cout), lambda i: (0, 0)),
                pl.BlockSpec((1, Cout), lambda i: (0, 0)),
            ],
            out_specs=pl.BlockSpec((tm, Cout), lambda i: (i, 0)),
        ),
        compiler_params=_CPARAMS_1D,
    )(xm, wm, bm)
    return out[:rows].reshape(N, H, W, Cout)


def _conv3x3_bn_relu_fused(streams, wk, bias, *, th, head=None):
    """3x3 conv + folded BN + ReLU over a list of already zero-padded NHWC
    streams (implicit channel concat), optionally fused with the classifier.

    streams: list of (N, H+2, W+2, c_s) bf16 arrays (zero-padded by 1).
    wk:      (3, 3*sum(c_s), Cout) bf16 (BN scale folded, kw-major K layout).
    bias:    (Cout,) f32 folded BN bias.
    head:    None or (wh (Cout, nc_pad) , bh (nc_pad,)).
    """
    N, Hp2, Wp2, _ = streams[0].shape
    H, W = Hp2 - 2, Wp2 - 2
    for s in streams:
        assert s.shape[:3] == (N, Hp2, Wp2)
    cins = tuple(int(s.shape[-1]) for s in streams)
    K, Cout = wk.shape[1], wk.shape[2]
    assert K == 3 * sum(cins)
    assert W % 8 == 0, "W must be a multiple of 8"
    assert H % th == 0 and th % 2 == 0

    nrt = H // th
    nt = N * nrt
    hh = th // 2

    main_map = lambda i: (i // nrt, i % nrt, 0, 0)
    halo_map = lambda i: (i // nrt, ((i % nrt) + 1) * hh, 0, 0)

    in_specs, call_args = [], []
    for s, c in zip(streams, cins):
        in_specs.append(pl.BlockSpec((1, th, Wp2, c), main_map))   # rows [r*th, r*th+th)
        in_specs.append(pl.BlockSpec((1, 2, Wp2, c), halo_map))    # rows [r*th+th, r*th+th+2)
        call_args += [s, s]
    in_specs.append(pl.BlockSpec((3, K, Cout), lambda i: (0, 0, 0)))   # resident weights
    in_specs.append(pl.BlockSpec((1, Cout), lambda i: (0, 0)))
    call_args += [wk.astype(jnp.bfloat16),
                  bias.reshape(1, Cout).astype(jnp.float32)]

    M = th * W
    scratch = [pltpu.VMEM((th + 2, W, K), jnp.bfloat16),
               pltpu.VMEM((M, Cout), jnp.float32)]

    if head is not None:
        wh, bh = head
        ncp = wh.shape[1]
        in_specs.append(pl.BlockSpec((Cout, ncp), lambda i: (0, 0)))
        in_specs.append(pl.BlockSpec((1, ncp), lambda i: (0, 0)))
        call_args += [wh.astype(jnp.bfloat16),
                      bh.reshape(1, ncp).astype(jnp.float32)]
        scratch.append(pltpu.VMEM((M, Cout), jnp.bfloat16))
        out_c, out_dtype = ncp, jnp.float32
    else:
        ncp = 0
        out_c, out_dtype = Cout, jnp.bfloat16

    kern = functools.partial(_conv3x3_kernel, th=th, W=W, cins=cins,
                             nc_pad=ncp, head=head is not None)
    return pl.pallas_call(
        kern,
        out_shape=jax.ShapeDtypeStruct((N, H, W, out_c), out_dtype),
        grid_spec=pltpu.PrefetchScalarGridSpec(
            num_scalar_prefetch=0,
            grid=(nt,),
            in_specs=in_specs,
            out_specs=pl.BlockSpec((1, th, W, out_c), main_map),
            scratch_shapes=scratch,
        ),
        compiler_params=_CPARAMS_1D,
    )(*call_args)


# --------------------------------------------------------------------------
# Bilinear (align_corners=True) upsample glue
# --------------------------------------------------------------------------
def _interp_matrix(out_size, in_size):
    if out_size == 1:          # degenerate align_corners case (guard /0)
        src = jnp.zeros((1,), jnp.float32)
    else:
        src = jnp.arange(out_size, dtype=jnp.float32) * ((in_size - 1) / (out_size - 1))
    j = jnp.arange(in_size, dtype=jnp.float32)
    return jnp.maximum(0.0, 1.0 - jnp.abs(src[:, None] - j[None, :]))


def _upsample_bilinear_padded(x_nhwc, out_h, out_w):
    # TODO(synk): the bilinear resize stays as two small XLA matmuls (glue).
    # The interpolation matrices carry a zero border row/col so the result is
    # emitted directly in the zero-padded frame the 3x3 conv kernel consumes.
    ah = jnp.pad(_interp_matrix(out_h, x_nhwc.shape[1]), ((1, 1), (0, 0)))
    aw = jnp.pad(_interp_matrix(out_w, x_nhwc.shape[2]), ((1, 1), (0, 0)))
    return jnp.einsum('hH,nHWc,wW->nhwc', ah, x_nhwc, aw)


# --------------------------------------------------------------------------
# Decoder forward (eval mode: BN running stats, Dropout = identity)
# --------------------------------------------------------------------------
def decoder_forward(x_nchw, low_nchw, p, *, eps=1e-5):
    # TODO(synk): training-mode Dropout / BatchNorm batch statistics are not implemented.
    N, _, H, W = low_nchw.shape
    cx = x_nchw.shape[1]
    low = jnp.transpose(low_nchw, (0, 2, 3, 1))
    x = jnp.transpose(x_nchw, (0, 2, 3, 1))

    # 1x1 low-level projection + BN + ReLU (BN folded into weight/bias).
    w1, b1 = _fold_bn(p['w1'], p['bn1_g'], p['bn1_b'], p['bn1_m'], p['bn1_v'], eps)
    low48 = _pointwise_conv_bn_relu(low, w1, b1, tm=512)          # (N,H,W,48) bf16
    low48_p = jnp.pad(low48, ((0, 0), (1, 1), (1, 1), (0, 0)))    # small (48 ch)

    # Bilinear upsample (align_corners=True) emitted straight into the padded frame.
    x_up_p = _upsample_bilinear_padded(x, H, W).astype(jnp.bfloat16)   # (N,H+2,W+2,cx)

    th = _pick_th(H, W, N)

    # conv3x3 (304 -> 256) with the channel concat fused (two input streams).
    wa, ba = _fold_bn(p['w_a'], p['bna_g'], p['bna_b'], p['bna_m'], p['bna_v'], eps)
    wk_a = jnp.concatenate([_fold_w3x3(wa[:, :cx]), _fold_w3x3(wa[:, cx:])], axis=1)
    h1 = _conv3x3_bn_relu_fused([x_up_p, low48_p], wk_a, ba, th=th)    # (N,H,W,256) bf16

    # TODO(synk): this re-pad is one extra HBM copy of h1; removable by fusing
    # conv_a+conv_b into a single kernel (redundant halo-row recompute).
    h1_p = jnp.pad(h1, ((0, 0), (1, 1), (1, 1), (0, 0)))

    # conv3x3 (256 -> 256) + fused 1x1 classifier (padded to 128 output lanes
    # for unmasked stores; sliced back below).
    wb, bb = _fold_bn(p['w_b'], p['bnb_g'], p['bnb_b'], p['bnb_m'], p['bnb_v'], eps)
    wk_b = _fold_w3x3(wb)
    nc = p['w_cls'].shape[0]
    ncp = _round_up(nc, 128)
    wh = jnp.zeros((wb.shape[0], ncp), jnp.float32).at[:, :nc].set(p['w_cls'][:, :, 0, 0].T)
    bh = jnp.zeros((ncp,), jnp.float32).at[:nc].set(p['b_cls'])
    out = _conv3x3_bn_relu_fused([h1_p], wk_b, bb, th=th, head=(wh, bh))  # (N,H,W,ncp) f32

    return jnp.transpose(out[..., :nc], (0, 3, 1, 2))


# --------------------------------------------------------------------------
# Pure-JAX (f32, NCHW) reference of the PyTorch module
# --------------------------------------------------------------------------
def _bn_ref(z, g, b, m, v, eps=1e-5):
    inv = 1.0 / jnp.sqrt(v + eps)
    return (z - m[None, :, None, None]) * (g * inv)[None, :, None, None] \
        + b[None, :, None, None]


def _conv_ref(x, w, padding):
    return jax.lax.conv_general_dilated(
        x, w, window_strides=(1, 1), padding=padding,
        dimension_numbers=("NCHW", "OIHW", "NCHW"))


def _bilinear_ref(x, out_h, out_w):
    N, C, Hi, Wi = x.shape
    ys = jnp.arange(out_h, dtype=jnp.float32) * (Hi - 1) / (out_h - 1)
    xs = jnp.arange(out_w, dtype=jnp.float32) * (Wi - 1) / (out_w - 1)
    y0 = jnp.clip(jnp.floor(ys), 0, Hi - 2).astype(jnp.int32)
    x0 = jnp.clip(jnp.floor(xs), 0, Wi - 2).astype(jnp.int32)
    fy = (ys - y0.astype(jnp.float32))[None, None, :, None]
    fx = (xs - x0.astype(jnp.float32))[None, None, None, :]
    g = lambda yi, xi: x[:, :, yi[:, None], xi[None, :]]
    top = g(y0, x0) * (1 - fx) + g(y0, x0 + 1) * fx
    bot = g(y0 + 1, x0) * (1 - fx) + g(y0 + 1, x0 + 1) * fx
    return top * (1 - fy) + bot * fy


def decoder_reference(x, low, p, eps=1e-5):
    llf = _conv_ref(low, p['w1'], 'VALID')
    llf = jnp.maximum(_bn_ref(llf, p['bn1_g'], p['bn1_b'], p['bn1_m'], p['bn1_v'], eps), 0.0)
    xu = _bilinear_ref(x, low.shape[2], low.shape[3])
    z = jnp.concatenate([xu, llf], axis=1)
    z = _conv_ref(z, p['w_a'], ((1, 1), (1, 1)))
    z = jnp.maximum(_bn_ref(z, p['bna_g'], p['bna_b'], p['bna_m'], p['bna_v'], eps), 0.0)
    z = _conv_ref(z, p['w_b'], ((1, 1), (1, 1)))
    z = jnp.maximum(_bn_ref(z, p['bnb_g'], p['bnb_b'], p['bnb_m'], p['bnb_v'], eps), 0.0)
    return _conv_ref(z, p['w_cls'], 'VALID') + p['b_cls'][None, :, None, None]


# --------------------------------------------------------------------------
if __name__ == "__main__":
    N = 2
    LOW_C = 256          # low_level_inplanes (resnet backbone)
    ASPP_C = 256         # channels of the high-level (ASPP) feature map
    NUM_CLASSES = 21
    H, W = 16, 16        # low-level feature spatial size
    HX, WX = 8, 8        # high-level feature spatial size (upsampled inside)

    key = jax.random.PRNGKey(0)
    ks = jax.random.split(key, 16)

    def kaiming(k, shape):   # torch.nn.init.kaiming_normal_ (fan_in, gain=sqrt(2))
        fan_in = shape[1] * shape[2] * shape[3]
        return (2.0 / fan_in) ** 0.5 * jax.random.normal(k, shape, jnp.float32)

    x = jax.random.normal(ks[0], (N, ASPP_C, HX, WX), jnp.float32)
    low = jax.random.normal(ks[1], (N, LOW_C, H, W), jnp.float32)

    params = dict(
        # conv1 (1x1, 256->48) + bn1   (gamma=1, beta=0 per _init_weight; eval
        # running stats made non-trivial so BN folding is actually exercised)
        w1=kaiming(ks[2], (48, LOW_C, 1, 1)),
        bn1_g=jnp.ones((48,), jnp.float32), bn1_b=jnp.zeros((48,), jnp.float32),
        bn1_m=0.1 * jax.random.normal(ks[3], (48,), jnp.float32),
        bn1_v=jax.random.uniform(ks[4], (48,), jnp.float32, 0.5, 1.5),
        # last_conv[0]: 3x3, 304->256, + BN
        w_a=kaiming(ks[5], (256, ASPP_C + 48, 3, 3)),
        bna_g=jnp.ones((256,), jnp.float32), bna_b=jnp.zeros((256,), jnp.float32),
        bna_m=0.1 * jax.random.normal(ks[6], (256,), jnp.float32),
        bna_v=jax.random.uniform(ks[7], (256,), jnp.float32, 0.5, 1.5),
        # last_conv[4]: 3x3, 256->256, + BN
        w_b=kaiming(ks[8], (256, 256, 3, 3)),
        bnb_g=jnp.ones((256,), jnp.float32), bnb_b=jnp.zeros((256,), jnp.float32),
        bnb_m=0.1 * jax.random.normal(ks[9], (256,), jnp.float32),
        bnb_v=jax.random.uniform(ks[10], (256,), jnp.float32, 0.5, 1.5),
        # last_conv[8]: 1x1, 256->num_classes (with bias)
        w_cls=kaiming(ks[11], (NUM_CLASSES, 256, 1, 1)),
        b_cls=0.05 * jax.random.normal(ks[12], (NUM_CLASSES,), jnp.float32),
    )

    out = decoder_forward(x, low, params)
    out = jax.block_until_ready(out)

    ref = decoder_reference(x, low, params)
    assert out.shape == ref.shape == (N, NUM_CLASSES, H, W)
    # bf16 matmuls with f32 accumulation vs. f32 reference -> relaxed tolerance.
    assert jnp.allclose(out, ref, atol=5e-2, rtol=5e-2), \
        float(jnp.max(jnp.abs(out - ref)))

    print("KERNEL_OK")
</pallas_src>

<mosaic_0001>
module attributes {stable_mosaic.version = 11 : i64} {
  func.func @_pointwise_bn_relu_kernel(%arg0: i32, %arg1: memref<512x256xbf16, #tpu.memory_space<vmem>>, %arg2: memref<256x48xbf16, #tpu.memory_space<vmem>>, %arg3: memref<1x48xf32, #tpu.memory_space<vmem>>, %arg4: memref<512x48xbf16, #tpu.memory_space<vmem>>) attributes {dimension_semantics = [#tpu.dimension_semantics<parallel>], iteration_bounds = array<i64: 1>, scalar_prefetch = 0 : i64, scratch_operands = 0 : i64, tpu.core_type = #tpu.core_type<tc>, window_params = [{transform_indices = @transform_0, window_bounds = array<i64: 512, 256>}, {pipeline_mode = #tpu.pipeline_mode<synchronous>, transform_indices = @transform_1, window_bounds = array<i64: 256, 48>}, {pipeline_mode = #tpu.pipeline_mode<synchronous>, transform_indices = @transform_2, window_bounds = array<i64: 1, 48>}, {transform_indices = @transform_3, window_bounds = array<i64: 512, 48>}]} {
    %c0 = arith.constant 0 : index
    %c0_0 = arith.constant 0 : index
    %0 = vector.load %arg1[%c0, %c0_0] : memref<512x256xbf16, #tpu.memory_space<vmem>>, vector<512x256xbf16>
    %c0_1 = arith.constant 0 : index
    %c0_2 = arith.constant 0 : index
    %1 = vector.load %arg2[%c0_1, %c0_2] : memref<256x48xbf16, #tpu.memory_space<vmem>>, vector<256x48xbf16>
    %cst = arith.constant dense<0.000000e+00> : vector<512x48xf32>
    %2 = tpu.matmul %0, %1, %cst {dimension_numbers = #tpu.dot_dimension_numbers<[1], [0], [0], [1], [0, 0, 1, 1], [], []>} : vector<512x256xbf16>, vector<256x48xbf16>, vector<512x48xf32> -> vector<512x48xf32>
    %c0_3 = arith.constant 0 : index
    %c0_4 = arith.constant 0 : index
    %3 = vector.load %arg3[%c0_3, %c0_4] : memref<1x48xf32, #tpu.memory_space<vmem>>, vector<1x48xf32>
    %4 = vector.broadcast %3 : vector<1x48xf32> to vector<512x48xf32>
    %5 = arith.addf %2, %4 : vector<512x48xf32>
    %cst_5 = arith.constant 0.000000e+00 : f32
    %6 = vector.broadcast %cst_5 : f32 to vector<512x48xf32>
    %7 = arith.maximumf %5, %6 : vector<512x48xf32>
    %8 = arith.truncf %7 : vector<512x48xf32> to vector<512x48xbf16>
    %c0_6 = arith.constant 0 : index
    %c0_7 = arith.constant 0 : index
    %9 = vector.load %arg4[%c0_6, %c0_7] : memref<512x48xbf16, #tpu.memory_space<vmem>>, vector<512x48xbf16>
    tpu.vector_store %arg4[%c0_6, %c0_7], %8 {strides = array<i32>} : memref<512x48xbf16, #tpu.memory_space<vmem>>, vector<512x48xbf16>,
    return
  }
  func.func @transform_0(%arg0: i32) -> (i32, i32) {
    %c0_i32 = arith.constant 0 : i32
    %c0_i32_0 = arith.constant 0 : i32
    return %arg0, %c0_i32 : i32, i32
  }
  func.func @transform_1(%arg0: i32) -> (i32, i32) {
    %c0_i32 = arith.constant 0 : i32
    %c0_i32_0 = arith.constant 0 : i32
    %c0_i32_1 = arith.constant 0 : i32
    return %c0_i32, %c0_i32_0 : i32, i32
  }
  func.func @transform_2(%arg0: i32) -> (i32, i32) {
    %c0_i32 = arith.constant 0 : i32
    %c0_i32_0 = arith.constant 0 : i32
    %c0_i32_1 = arith.constant 0 : i32
    return %c0_i32, %c0_i32_0 : i32, i32
  }
  func.func @transform_3(%arg0: i32) -> (i32, i32) {
    %c0_i32 = arith.constant 0 : i32
    %c0_i32_0 = arith.constant 0 : i32
    return %arg0, %c0_i32 : i32, i32
  }
}

</mosaic_0001>

<bundles_post_ra>
// kernel: tpu_custom_call.1
= control target key start
LH: loop header
LB: loop body
LE: loop exit
PB: predicated region body
PF: predicated region fallthrough
CT: control target
= control target key end

     0   :  { %8 = vsyncpa [#allocation3], 0  ;;  %s1529_s15 = smov [#allocation2]   ;;  %s1530_s17 = smov 128   ;;  %s1922_s0 = inlined_call_operand.hbm [shape: bf16[512,256], index: 0, kind: input, shape index: {}]   ;;  %s1923_s1 = inlined_call_operand.vmem [shape: bf16[256,48], index: 1, kind: input, shape index: {}]   ;;  %s1924_s2 = inlined_call_operand.vmem [shape: f32[1,48], index: 2, kind: input, shape index: {}]   ;;  %s1925_s3 = inlined_call_operand.vmem [shape: bf16[512,48], index: 3, kind: output, shape index: {}]  }
   0x1   :  { %s13_s14 = sshll.u32 %s1922_s0, 4  ;;  %s15_s16 = sshll.u32 %s1529_s15, 4  ;;  %s14_s14 = int_to_ptr.hbm [resolvable:$true] %s13_s14  ;;  %s16_s16 = int_to_ptr.vmem [resolvable:$true] %s15_s16 }
   0x2   :  { %s1531_s18 = smov 8  }
   0x3   :  { %21 = dma.hbm_to_vmem [thread:$0]  %s14_s14, 8192, %s16_s16, [#allocation3], %s1530_s17, %s1530_s17, %s1531_s18  }
   0x4   :  { %1527 = dma.done.wait [#allocation3], 8192  }
   0x5   :  { %1528 = vsyncadd [#allocation3], 4294959104  ;;  %v1473_v0 = vld [vmem:[%s1923_s1 + $0x38] sm:$0xff]  ;;  %v1472_v2 = vld [vmem:[%s1923_s1 + $0x30] sm:$0xff]  ;;  %vm1012_vm0 = vcmask 388096  }
   0x6   :  { %v1481_v1 = vld [vmem:[%s1923_s1 + $0x78] sm:$0xff]  ;;  %546 = vmatpush.bf16.msra.mxu0 %v1473_v0  ;;  %1482 = vmatpush.bf16.msra.mxu2 %v1473_v0  ;;  %v1480_v3 = vld [vmem:[%s1923_s1 + $0x70] sm:$0xff]  ;;  %v1471_v4 = vld [vmem:[%s1923_s1 + $0x28] sm:$0xff] }
   0x7   :  { %715 = vmatpush.bf16.msra.mxu1 %v1481_v1  ;;  %1490 = vmatpush.bf16.msra.mxu3 %v1481_v1  ;;  %v1479_v5 = vld [vmem:[%s1923_s1 + $0x68] sm:$0xff]  ;;  %v1470_v6 = vld [vmem:[%s1923_s1 + $0x20] sm:$0xff]  ;;  %v1469_v8 = vld [vmem:[%s1923_s1 + $0x18] sm:$0xff] }
   0x8   :  { %v1478_v7 = vld [vmem:[%s1923_s1 + $0x60] sm:$0xff]  ;;  %v1477_v9 = vld [vmem:[%s1923_s1 + $0x58] sm:$0xff]  ;;  %v1468_v10 = vld [vmem:[%s1923_s1 + $0x10] sm:$0xff] }
   0x9   :  { %v1476_v11 = vld [vmem:[%s1923_s1 + $0x50] sm:$0xff]  ;;  %v1467_v12 = vld [vmem:[%s1923_s1 + $0x8] sm:$0xff]  ;;  %v1466_v14 = vld [vmem:[%s1923_s1] sm:$0xff] }
   0xa   :  { %547 = vmatpush.bf16.msra.mxu0 %v1472_v2  ;;  %1483 = vmatpush.bf16.msra.mxu2 %v1472_v2  ;;  %v1475_v13 = vld [vmem:[%s1923_s1 + $0x48] sm:$0xff]  ;;  %v1474_v15 = vld [vmem:[%s1923_s1 + $0x40] sm:$0xff]  ;;  %v1092_v28 = vld [vmem:[#allocation2 + $0x10] sm:$0xf] }
   0xb   :  { %716 = vmatpush.bf16.msra.mxu1 %v1480_v3  ;;  %1491 = vmatpush.bf16.msra.mxu3 %v1480_v3  ;;  %v1084_v16 = vld [vmem:[#allocation2] sm:$0xf]  ;;  %v1403_v17 = vld [vmem:[#allocation2 + $0x4] sm:$0xf0]  ;;  %v1402_v20 = vld [vmem:[#allocation2 + $0x4] sm:$0xf] }
   0xc   :  { %v1212_v18 = vld [vmem:[#allocation2 + $0x100] sm:$0xf]  ;;  %v1435_v19 = vld [vmem:[#allocation2 + $0x104] sm:$0xf0]  ;;  %v1086_v21 = vld [vmem:[#allocation2 + $0x8] sm:$0xf0]  ;;  %v1085_v24 = vor.u32 %v1403_v17, %v1084_v16 }
   0xd   :  { %v1434_v22 = vld [vmem:[#allocation2 + $0x104] sm:$0xf]  ;;  %v1214_v23 = vld [vmem:[#allocation2 + $0x108] sm:$0xf0]  ;;  %v1213_v25 = vor.u32 %v1435_v19, %v1212_v18  ;;  %v1089_v26 = vor.u32 %v1402_v20, %v1086_v21  ;;  %v1405_v29 = vld [vmem:[#allocation2 + $0x14] sm:$0xf0] }
   0xe   :  { %548 = vmatpush.bf16.msra.mxu0 %v1471_v4  ;;  %1484 = vmatpush.bf16.msra.mxu2 %v1471_v4  ;;  %v1217_v27 = vor.u32 %v1434_v22, %v1214_v23  ;;  %v1220_v30 = vld [vmem:[#allocation2 + $0x110] sm:$0xf]  ;;  %v1437_v31 = vld [vmem:[#allocation2 + $0x114] sm:$0xf0]  ;;  %v1404_v32 = vld [vmem:[#allocation2 + $0x14] sm:$0xf]  ;;  %v1093_v36 = vor.u32 %v1405_v29, %v1092_v28 }
   0xf   :  { %717 = vmatpush.bf16.msra.mxu1 %v1479_v5  ;;  %1492 = vmatpush.bf16.msra.mxu3 %v1479_v5  ;;  %v1094_v33 = vld [vmem:[#allocation2 + $0x18] sm:$0xf0]  ;;  %v1436_v34 = vld [vmem:[#allocation2 + $0x114] sm:$0xf]  ;;  %v1221_v37 = vor.u32 %v1437_v31, %v1220_v30  ;;  %v1100_v40 = vld [vmem:[#allocation2 + $0x20] sm:$0xf] }
  0x10   :  { %v1222_v35 = vld [vmem:[#allocation2 + $0x118] sm:$0xf0]  ;;  %v1097_v38 = vor.u32 %v1404_v32, %v1094_v33  ;;  %v1407_v41 = vld [vmem:[#allocation2 + $0x24] sm:$0xf0]  ;;  %v1228_v42 = vld [vmem:[#allocation2 + $0x120] sm:$0xf] }
  0x11   :  { %v1225_v39 = vor.u32 %v1436_v34, %v1222_v35  ;;  %v1439_v43 = vld [vmem:[#allocation2 + $0x124] sm:$0xf0]  ;;  %v1406_v44 = vld [vmem:[#allocation2 + $0x24] sm:$0xf]  ;;  %v1102_v45 = vld [vmem:[#allocation2 + $0x28] sm:$0xf0]  ;;  %v1101_v48 = vor.u32 %v1407_v41, %v1100_v40 }
  0x12   :  { %549 = vmatpush.bf16.msra.mxu0 %v1470_v6  ;;  %1485 = vmatpush.bf16.msra.mxu2 %v1470_v6  ;;  %v1438_v46 = vld [vmem:[#allocation2 + $0x124] sm:$0xf]  ;;  %v1230_v47 = vld [vmem:[#allocation2 + $0x128] sm:$0xf0]  ;;  %v1229_v49 = vor.u32 %v1439_v43, %v1228_v42  ;;  %v1105_v50 = vor.u32 %v1406_v44, %v1102_v45  ;;  %v1108_v52 = vld [vmem:[#allocation2 + $0x30] sm:$0xf] }
  0x13   :  { %718 = vmatpush.bf16.msra.mxu1 %v1478_v7  ;;  %1493 = vmatpush.bf16.msra.mxu3 %v1478_v7  ;;  %v1233_v51 = vor.u32 %v1438_v46, %v1230_v47  ;;  %v1409_v53 = vld [vmem:[#allocation2 + $0x34] sm:$0xf0]  ;;  %v1236_v54 = vld [vmem:[#allocation2 + $0x130] sm:$0xf]  ;;  %v1408_v56 = vld [vmem:[#allocation2 + $0x34] sm:$0xf] }
  0x14   :  { %v1441_v55 = vld [vmem:[#allocation2 + $0x134] sm:$0xf0]  ;;  %v1110_v57 = vld [vmem:[#allocation2 + $0x38] sm:$0xf0]  ;;  %v1440_v58 = vld [vmem:[#allocation2 + $0x134] sm:$0xf]  ;;  %v1109_v60 = vor.u32 %v1409_v53, %v1108_v52 }
  0x15   :  { %v1238_v59 = vld [vmem:[#allocation2 + $0x138] sm:$0xf0]  ;;  %v1237_v61 = vor.u32 %v1441_v55, %v1236_v54  ;;  %v1113_v62 = vor.u32 %v1408_v56, %v1110_v57  ;;  %v1116_v0 = vld [vmem:[#allocation2 + $0x40] sm:$0xf]  ;;  %v1411_v1 = vld [vmem:[#allocation2 + $0x44] sm:$0xf0] }
  0x16   :  { %550 = vmatpush.bf16.msra.mxu0 %v1469_v8  ;;  %1486 = vmatpush.bf16.msra.mxu2 %v1469_v8  ;;  %v1241_v63 = vor.u32 %v1440_v58, %v1238_v59  ;;  %v1244_v2 = vld [vmem:[#allocation2 + $0x140] sm:$0xf]  ;;  %v1443_v3 = vld [vmem:[#allocation2 + $0x144] sm:$0xf0]  ;;  %v1410_v4 = vld [vmem:[#allocation2 + $0x44] sm:$0xf]  ;;  %v1117_v8 = vor.u32 %v1411_v1, %v1116_v0 }
  0x17   :  { %719 = vmatpush.bf16.msra.mxu1 %v1477_v9  ;;  %1494 = vmatpush.bf16.msra.mxu3 %v1477_v9  ;;  %v1118_v5 = vld [vmem:[#allocation2 + $0x48] sm:$0xf0]  ;;  %v1442_v6 = vld [vmem:[#allocation2 + $0x144] sm:$0xf]  ;;  %v1245_v9 = vor.u32 %v1443_v3, %v1244_v2  ;;  %v1412_v16 = vld [vmem:[#allocation2 + $0x54] sm:$0xf] }
  0x18   :  { %v1246_v7 = vld [vmem:[#allocation2 + $0x148] sm:$0xf0]  ;;  %v1126_v17 = vld [vmem:[#allocation2 + $0x58] sm:$0xf0]  ;;  %v1444_v18 = vld [vmem:[#allocation2 + $0x154] sm:$0xf] }
  0x19   :  { %v1254_v19 = vld [vmem:[#allocation2 + $0x158] sm:$0xf0]  ;;  %v1129_v22 = vor.u32 %v1412_v16, %v1126_v17  ;;  %v1414_v28 = vld [vmem:[#allocation2 + $0x64] sm:$0xf]  ;;  %v1134_v29 = vld [vmem:[#allocation2 + $0x68] sm:$0xf0] }
  0x1a   :  { %551 = vmatpush.bf16.msra.mxu0 %v1468_v10  ;;  %1487 = vmatpush.bf16.msra.mxu2 %v1468_v10  ;;  %v1121_v10 = vor.u32 %v1410_v4, %v1118_v5  ;;  %v1257_v23 = vor.u32 %v1444_v18, %v1254_v19  ;;  %v1446_v30 = vld [vmem:[#allocation2 + $0x164] sm:$0xf]  ;;  %v1262_v31 = vld [vmem:[#allocation2 + $0x168] sm:$0xf0]  ;;  %v1137_v34 = vor.u32 %v1414_v28, %v1134_v29  ;;  %v1416_v40 = vld [vmem:[#allocation2 + $0x74] sm:$0xf] }
  0x1b   :  { %720 = vmatpush.bf16.msra.mxu1 %v1476_v11  ;;  %1495 = vmatpush.bf16.msra.mxu3 %v1476_v11  ;;  %v1249_v11 = vor.u32 %v1442_v6, %v1246_v7  ;;  %v1265_v35 = vor.u32 %v1446_v30, %v1262_v31  ;;  %v1142_v41 = vld [vmem:[#allocation2 + $0x78] sm:$0xf0]  ;;  %v1448_v42 = vld [vmem:[#allocation2 + $0x174] sm:$0xf]  ;;  %v1451_v52 = vld [vmem:[#allocation2 + $0x184] sm:$0xf0] }
  0x1c   :  { %v1270_v43 = vld [vmem:[#allocation2 + $0x178] sm:$0xf0]  ;;  %v1145_v46 = vor.u32 %v1416_v40, %v1142_v41  ;;  %v1418_v53 = vld [vmem:[#allocation2 + $0x84] sm:$0xf]  ;;  %v1150_v54 = vld [vmem:[#allocation2 + $0x88] sm:$0xf0] }
  0x1d   :  { %v1273_v47 = vor.u32 %v1448_v42, %v1270_v43  ;;  %v1450_v55 = vld [vmem:[#allocation2 + $0x184] sm:$0xf]  ;;  %v1278_v56 = vld [vmem:[#allocation2 + $0x188] sm:$0xf0]  ;;  %v1420_v16 = vld [vmem:[#allocation2 + $0x94] sm:$0xf] }
  0x1e   :  { %552 = vmatpush.bf16.msra.mxu0 %v1467_v12  ;;  %1488 = vmatpush.bf16.msra.mxu2 %v1467_v12  ;;  %v1124_v12 = vld [vmem:[#allocation2 + $0x50] sm:$0xf]  ;;  %v1158_v17 = vld [vmem:[#allocation2 + $0x98] sm:$0xf0] }
  0x1f   :  { %721 = vmatpush.bf16.msra.mxu1 %v1475_v13  ;;  %1496 = vmatpush.bf16.msra.mxu3 %v1475_v13  ;;  %v1413_v13 = vld [vmem:[#allocation2 + $0x54] sm:$0xf0]  ;;  %v1161_v29 = vor.u32 %v1420_v16, %v1158_v17 }
  0x20   :  { %v1125_v20 = vor.u32 %v1413_v13, %v1124_v12  ;;  %v1421_v13 = vld [vmem:[#allocation2 + $0x94] sm:$0xf0] }
  0x22   :  { %553 = vmatpush.bf16.msra.mxu0 %v1466_v14  ;;  %1489 = vmatpush.bf16.msra.mxu2 %v1466_v14  ;;  %v1252_v14 = vld [vmem:[#allocation2 + $0x150] sm:$0xf] }
  0x23   :  { %722 = vmatpush.bf16.msra.mxu1 %v1474_v15  ;;  %1497 = vmatpush.bf16.msra.mxu3 %v1474_v15  ;;  %v1445_v15 = vld [vmem:[#allocation2 + $0x154] sm:$0xf0] }
  0x24   :  { %v1253_v21 = vor.u32 %v1445_v15, %v1252_v14  ;;  %v1284_v14 = vld [vmem:[#allocation2 + $0x190] sm:$0xf]  ;;  %v1453_v15 = vld [vmem:[#allocation2 + $0x194] sm:$0xf0] }
  0x25   :  { %554 = vmatmul.bf16.vlgmr.msra.gmra.mxu0 %v1085_v24  ;;  %634 = vmatmul.bf16.vlgmr.msra.gmra.mxu2 %v1213_v25  ;;  %v1132_v24 = vld [vmem:[#allocation2 + $0x60] sm:$0xf]  ;;  %v1415_v25 = vld [vmem:[#allocation2 + $0x64] sm:$0xf0] }
  0x26   :  { %723 = vmatmul.bf16.vlgmr.msra.gmra.mxu1 %v1089_v26  ;;  %803 = vmatmul.bf16.vlgmr.msra.gmra.mxu3 %v1217_v27  ;;  %v1260_v26 = vld [vmem:[#allocation2 + $0x160] sm:$0xf]  ;;  %v1447_v27 = vld [vmem:[#allocation2 + $0x164] sm:$0xf0]  ;;  %v1133_v32 = vor.u32 %v1415_v25, %v1132_v24 }
  0x27   :  { %v1261_v33 = vor.u32 %v1447_v27, %v1260_v26  ;;  %v1285_v27 = vor.u32 %v1453_v15, %v1284_v14 }
  0x35   :  { %559 = vmatmul.bf16.gmra.mxu0 %v1093_v36  ;;  %639 = vmatmul.bf16.gmra.mxu2 %v1221_v37  ;;  %v1140_v36 = vld [vmem:[#allocation2 + $0x70] sm:$0xf]  ;;  %v1417_v37 = vld [vmem:[#allocation2 + $0x74] sm:$0xf0] }
  0x36   :  { %728 = vmatmul.bf16.gmra.mxu1 %v1097_v38  ;;  %808 = vmatmul.bf16.gmra.mxu3 %v1225_v39  ;;  %v1268_v38 = vld [vmem:[#allocation2 + $0x170] sm:$0xf]  ;;  %v1449_v39 = vld [vmem:[#allocation2 + $0x174] sm:$0xf0]  ;;  %v1141_v44 = vor.u32 %v1417_v37, %v1140_v36 }
  0x37   :  { %v1269_v45 = vor.u32 %v1449_v39, %v1268_v38 }
  0x45   :  { %564 = vmatmul.bf16.gmra.mxu0 %v1101_v48  ;;  %644 = vmatmul.bf16.gmra.mxu2 %v1229_v49  ;;  %v1606_v48 = vld [vmem:[%s1924_s2] ss:$0 sm:$0xff] }
  0x46   :  { %733 = vmatmul.bf16.gmra.mxu1 %v1105_v50  ;;  %813 = vmatmul.bf16.gmra.mxu3 %v1233_v51  ;;  %v1148_v49 = vld [vmem:[#allocation2 + $0x80] sm:$0xf]  ;;  %v1419_v50 = vld [vmem:[#allocation2 + $0x84] sm:$0xf0] }
  0x47   :  { %v1276_v51 = vld [vmem:[#allocation2 + $0x180] sm:$0xf]  ;;  %v1149_v57 = vor.u32 %v1419_v50, %v1148_v49  ;;  %v1423_v50 = vld [vmem:[#allocation2 + $0xa4] sm:$0xf0] }
  0x48   :  { %v1277_v58 = vor.u32 %v1451_v52, %v1276_v51  ;;  %v1292_v51 = vld [vmem:[#allocation2 + $0x1a0] sm:$0xf]  ;;  %v1455_v52 = vld [vmem:[#allocation2 + $0x1a4] sm:$0xf0] }
  0x55   :  { %569 = vmatmul.bf16.gmra.mxu0 %v1109_v60  ;;  %649 = vmatmul.bf16.gmra.mxu2 %v1237_v61  ;;  %v1153_v60 = vor.u32 %v1418_v53, %v1150_v54  ;;  %v1281_v61 = vor.u32 %v1450_v55, %v1278_v56  ;;  %v1422_v53 = vld [vmem:[#allocation2 + $0xa4] sm:$0xf]  ;;  %v1166_v54 = vld [vmem:[#allocation2 + $0xa8] sm:$0xf0] }
  0x56   :  { %738 = vmatmul.bf16.gmra.mxu1 %v1113_v62  ;;  %818 = vmatmul.bf16.gmra.mxu3 %v1241_v63 }
  0x65   :  { %574 = vmatmul.bf16.gmra.mxu0 %v1117_v8  ;;  %654 = vmatmul.bf16.gmra.mxu2 %v1245_v9 }
  0x66   :  { %743 = vmatmul.bf16.gmra.mxu1 %v1121_v10  ;;  %823 = vmatmul.bf16.gmra.mxu3 %v1249_v11  ;;  %v1156_v10 = vld [vmem:[#allocation2 + $0x90] sm:$0xf] }
  0x67   :  { %v1157_v26 = vor.u32 %v1421_v13, %v1156_v10 }
  0x75   :  { %579 = vmatmul.bf16.gmra.mxu0 %v1125_v20  ;;  %659 = vmatmul.bf16.gmra.mxu2 %v1253_v21  ;;  %v1452_v20 = vld [vmem:[#allocation2 + $0x194] sm:$0xf]  ;;  %v1286_v21 = vld [vmem:[#allocation2 + $0x198] sm:$0xf0] }
  0x76   :  { %748 = vmatmul.bf16.gmra.mxu1 %v1129_v22  ;;  %828 = vmatmul.bf16.gmra.mxu3 %v1257_v23  ;;  %v1289_v30 = vor.u32 %v1452_v20, %v1286_v21 }
  0x85   :  { %584 = vmatmul.bf16.gmra.mxu0 %v1133_v32  ;;  %664 = vmatmul.bf16.gmra.mxu2 %v1261_v33 }
  0x86   :  { %753 = vmatmul.bf16.gmra.mxu1 %v1137_v34  ;;  %833 = vmatmul.bf16.gmra.mxu3 %v1265_v35 }
  0x95   :  { %589 = vmatmul.bf16.gmra.mxu0 %v1141_v44  ;;  %669 = vmatmul.bf16.gmra.mxu2 %v1269_v45 }
  0x96   :  { %758 = vmatmul.bf16.gmra.mxu1 %v1145_v46  ;;  %838 = vmatmul.bf16.gmra.mxu3 %v1273_v47  ;;  %v1164_v46 = vld [vmem:[#allocation2 + $0xa0] sm:$0xf] }
  0xa2   :  { %v555_v59 = vpop.f32.mrf.mxu0 }
  0xa3   :  { %v556_v62 = vadd.f32 %v1606_v48, %v555_v59  ;;  %v724_v63 = vpop.f32.mrf.mxu1 }
  0xa5   :  { %v725_v0 = vadd.f32 %v724_v63, %v556_v62  ;;  %594 = vmatmul.bf16.gmra.mxu0 %v1149_v57  ;;  %674 = vmatmul.bf16.gmra.mxu2 %v1277_v58  ;;  %v1454_v57 = vld [vmem:[#allocation2 + $0x1a4] sm:$0xf]  ;;  %v1294_v58 = vld [vmem:[#allocation2 + $0x1a8] sm:$0xf0]  ;;  %v1165_v63 = vor.u32 %v1423_v50, %v1164_v46 }
  0xa6   :  { %763 = vmatmul.bf16.gmra.mxu1 %v1153_v60  ;;  %843 = vmatmul.bf16.gmra.mxu3 %v1281_v61 }
  0xa7   :  { %v884_v1 = vmax.f32 %v725_v0, 0.0  ;;  %v1293_v0 = vor.u32 %v1455_v52, %v1292_v51 }
  0xa8   :  { %v635_v2 = vpop.f32.mrf.mxu2 }
  0xa9   :  { %v948_v3 = vpack.c.bf16 %v884_v1, %v884_v1  ;;  %v636_v4 = vadd.f32 %v1606_v48, %v635_v2  ;;  %v804_v5 = vpop.f32.mrf.mxu3  ;;  %v1169_v2 = vor.u32 %v1422_v53, %v1166_v54 }
  0xaa   :  { %v557_v6 = vpop.f32.mrf.mxu0 }
  0xab   :  { %1013 = vst.msk [vmem:[%s1925_s3] sm:$0xf] %vm1012_vm0, %v948_v3  ;;  %v805_v7 = vadd.f32 %v804_v5, %v636_v4  ;;  %v558_v8 = vadd.f32 %v1606_v48, %v557_v6  ;;  %v726_v9 = vpop.f32.mrf.mxu1  ;;  %v1297_v3 = vor.u32 %v1454_v57, %v1294_v58 }
  0xad   :  { %v916_v11 = vmax.f32 %v805_v7, 0.0  ;;  %v727_v12 = vadd.f32 %v726_v9, %v558_v8 }
  0xaf   :  { %v980_v18 = vpack.c.bf16 %v916_v11, %v916_v11  ;;  %v885_v19 = vmax.f32 %v727_v12, 0.0 }
  0xb0   :  { %v637_v22 = vpop.f32.mrf.mxu2 }
  0xb1   :  { %1045 = vst.msk [vmem:[%s1925_s3 + $0x80] sm:$0xf] %vm1012_vm0, %v980_v18  ;;  %v949_v23 = vpack.c.bf16 %v885_v19, %v885_v19  ;;  %v638_v24 = vadd.f32 %v1606_v48, %v637_v22  ;;  %v806_v25 = vpop.f32.mrf.mxu3  ;;  %v1172_v19 = vld [vmem:[#allocation2 + $0xb0] sm:$0xf]  ;;  %v1425_v22 = vld [vmem:[#allocation2 + $0xb4] sm:$0xf0] }
  0xb2   :  { %v560_v28 = vpop.f32.mrf.mxu0 }
  0xb3   :  { %1014 = vst.msk [vmem:[%s1925_s3 + $0x4] sm:$0xf] %vm1012_vm0, %v949_v23  ;;  %v807_v31 = vadd.f32 %v806_v25, %v638_v24  ;;  %v561_v32 = vadd.f32 %v1606_v48, %v560_v28  ;;  %v729_v33 = vpop.f32.mrf.mxu1  ;;  %v1300_v23 = vld [vmem:[#allocation2 + $0x1b0] sm:$0xf]  ;;  %v1457_v24 = vld [vmem:[#allocation2 + $0x1b4] sm:$0xf0] }
  0xb4   :  { %v1424_v25 = vld [vmem:[#allocation2 + $0xb4] sm:$0xf] }
  0xb5   :  { %v917_v34 = vmax.f32 %v807_v31, 0.0  ;;  %v730_v35 = vadd.f32 %v729_v33, %v561_v32  ;;  %599 = vmatmul.bf16.gmra.mxu0 %v1157_v26  ;;  %679 = vmatmul.bf16.gmra.mxu2 %v1285_v27  ;;  %v1174_v26 = vld [vmem:[#allocation2 + $0xb8] sm:$0xf0] }
  0xb6   :  { %768 = vmatmul.bf16.gmra.mxu1 %v1161_v29  ;;  %848 = vmatmul.bf16.gmra.mxu3 %v1289_v30  ;;  %v1456_v29 = vld [vmem:[#allocation2 + $0x1b4] sm:$0xf]  ;;  %v1302_v30 = vld [vmem:[#allocation2 + $0x1b8] sm:$0xf0] }
  0xb7   :  { %v981_v36 = vpack.c.bf16 %v917_v34, %v917_v34  ;;  %v886_v37 = vmax.f32 %v730_v35, 0.0  ;;  %v1173_v35 = vor.u32 %v1425_v22, %v1172_v19 }
  0xb8   :  { %v640_v38 = vpop.f32.mrf.mxu2 }
  0xb9   :  { %1046 = vst.msk [vmem:[%s1925_s3 + $0x84] sm:$0xf] %vm1012_vm0, %v981_v36  ;;  %v950_v39 = vpack.c.bf16 %v886_v37, %v886_v37  ;;  %v641_v40 = vadd.f32 %v1606_v48, %v640_v38  ;;  %v809_v41 = vpop.f32.mrf.mxu3  ;;  %v1301_v36 = vor.u32 %v1457_v24, %v1300_v23  ;;  %v1177_v38 = vor.u32 %v1424_v25, %v1174_v26 }
  0xba   :  { %v562_v42 = vpop.f32.mrf.mxu0 }
  0xbb   :  { %1015 = vst.msk [vmem:[%s1925_s3 + $0x8] sm:$0xf] %vm1012_vm0, %v950_v39  ;;  %v810_v43 = vadd.f32 %v809_v41, %v641_v40  ;;  %v563_v44 = vadd.f32 %v1606_v48, %v562_v42  ;;  %v731_v45 = vpop.f32.mrf.mxu1  ;;  %v1305_v39 = vor.u32 %v1456_v29, %v1302_v30 }
  0xbd   :  { %v918_v47 = vmax.f32 %v810_v43, 0.0  ;;  %v732_v49 = vadd.f32 %v731_v45, %v563_v44 }
  0xbf   :  { %v982_v55 = vpack.c.bf16 %v918_v47, %v918_v47  ;;  %v887_v56 = vmax.f32 %v732_v49, 0.0 }
  0xc0   :  { %v642_v59 = vpop.f32.mrf.mxu2 }
  0xc1   :  { %1047 = vst.msk [vmem:[%s1925_s3 + $0x88] sm:$0xf] %vm1012_vm0, %v982_v55  ;;  %v951_v60 = vpack.c.bf16 %v887_v56, %v887_v56  ;;  %v643_v61 = vadd.f32 %v1606_v48, %v642_v59  ;;  %v811_v62 = vpop.f32.mrf.mxu3  ;;  %v1180_v56 = vld [vmem:[#allocation2 + $0xc0] sm:$0xf]  ;;  %v1427_v59 = vld [vmem:[#allocation2 + $0xc4] sm:$0xf0] }
  0xc2   :  { %v565_v1 = vpop.f32.mrf.mxu0 }
  0xc3   :  { %1016 = vst.msk [vmem:[%s1925_s3 + $0xc] sm:$0xf] %vm1012_vm0, %v951_v60  ;;  %v812_v4 = vadd.f32 %v811_v62, %v643_v61  ;;  %v566_v5 = vadd.f32 %v1606_v48, %v565_v1  ;;  %v734_v6 = vpop.f32.mrf.mxu1  ;;  %v1308_v60 = vld [vmem:[#allocation2 + $0x1c0] sm:$0xf]  ;;  %v1459_v61 = vld [vmem:[#allocation2 + $0x1c4] sm:$0xf0] }
  0xc4   :  { %v1426_v62 = vld [vmem:[#allocation2 + $0xc4] sm:$0xf] }
  0xc5   :  { %v919_v7 = vmax.f32 %v812_v4, 0.0  ;;  %v735_v8 = vadd.f32 %v734_v6, %v566_v5  ;;  %604 = vmatmul.bf16.gmra.mxu0 %v1165_v63  ;;  %684 = vmatmul.bf16.gmra.mxu2 %v1293_v0  ;;  %v1182_v63 = vld [vmem:[#allocation2 + $0xc8] sm:$0xf0] }
  0xc6   :  { %773 = vmatmul.bf16.gmra.mxu1 %v1169_v2  ;;  %853 = vmatmul.bf16.gmra.mxu3 %v1297_v3  ;;  %v1458_v2 = vld [vmem:[#allocation2 + $0x1c4] sm:$0xf]  ;;  %v1310_v3 = vld [vmem:[#allocation2 + $0x1c8] sm:$0xf0] }
  0xc7   :  { %v983_v9 = vpack.c.bf16 %v919_v7, %v919_v7  ;;  %v888_v10 = vmax.f32 %v735_v8, 0.0  ;;  %v1181_v8 = vor.u32 %v1427_v59, %v1180_v56 }
  0xc8   :  { %v645_v11 = vpop.f32.mrf.mxu2 }
  0xc9   :  { %1048 = vst.msk [vmem:[%s1925_s3 + $0x8c] sm:$0xf] %vm1012_vm0, %v983_v9  ;;  %v952_v12 = vpack.c.bf16 %v888_v10, %v888_v10  ;;  %v646_v13 = vadd.f32 %v1606_v48, %v645_v11  ;;  %v814_v14 = vpop.f32.mrf.mxu3  ;;  %v1309_v9 = vor.u32 %v1459_v61, %v1308_v60  ;;  %v1185_v11 = vor.u32 %v1426_v62, %v1182_v63 }
  0xca   :  { %v567_v15 = vpop.f32.mrf.mxu0 }
  0xcb   :  { %1017 = vst.msk [vmem:[%s1925_s3 + $0x10] sm:$0xf] %vm1012_vm0, %v952_v12  ;;  %v815_v16 = vadd.f32 %v814_v14, %v646_v13  ;;  %v568_v17 = vadd.f32 %v1606_v48, %v567_v15  ;;  %v736_v18 = vpop.f32.mrf.mxu1  ;;  %v1313_v12 = vor.u32 %v1458_v2, %v1310_v3 }
  0xcd   :  { %v920_v20 = vmax.f32 %v815_v16, 0.0  ;;  %v737_v21 = vadd.f32 %v736_v18, %v568_v17 }
  0xcf   :  { %v984_v27 = vpack.c.bf16 %v920_v20, %v920_v20  ;;  %v889_v28 = vmax.f32 %v737_v21, 0.0 }
  0xd0   :  { %v647_v31 = vpop.f32.mrf.mxu2 }
  0xd1   :  { %1049 = vst.msk [vmem:[%s1925_s3 + $0x90] sm:$0xf] %vm1012_vm0, %v984_v27  ;;  %v953_v32 = vpack.c.bf16 %v889_v28, %v889_v28  ;;  %v648_v33 = vadd.f32 %v1606_v48, %v647_v31  ;;  %v816_v34 = vpop.f32.mrf.mxu3  ;;  %v1188_v28 = vld [vmem:[#allocation2 + $0xd0] sm:$0xf]  ;;  %v1429_v31 = vld [vmem:[#allocation2 + $0xd4] sm:$0xf0] }
  0xd2   :  { %v570_v37 = vpop.f32.mrf.mxu0 }
  0xd3   :  { %1018 = vst.msk [vmem:[%s1925_s3 + $0x14] sm:$0xf] %vm1012_vm0, %v953_v32  ;;  %v817_v40 = vadd.f32 %v816_v34, %v648_v33  ;;  %v571_v41 = vadd.f32 %v1606_v48, %v570_v37  ;;  %v739_v42 = vpop.f32.mrf.mxu1  ;;  %v1316_v32 = vld [vmem:[#allocation2 + $0x1d0] sm:$0xf]  ;;  %v1461_v33 = vld [vmem:[#allocation2 + $0x1d4] sm:$0xf0] }
  0xd4   :  { %v1428_v34 = vld [vmem:[#allocation2 + $0xd4] sm:$0xf] }
  0xd5   :  { %v921_v43 = vmax.f32 %v817_v40, 0.0  ;;  %v740_v44 = vadd.f32 %v739_v42, %v571_v41  ;;  %609 = vmatmul.bf16.gmra.mxu0 %v1173_v35  ;;  %689 = vmatmul.bf16.gmra.mxu2 %v1301_v36  ;;  %v1190_v35 = vld [vmem:[#allocation2 + $0xd8] sm:$0xf0] }
  0xd6   :  { %778 = vmatmul.bf16.gmra.mxu1 %v1177_v38  ;;  %858 = vmatmul.bf16.gmra.mxu3 %v1305_v39  ;;  %v1460_v38 = vld [vmem:[#allocation2 + $0x1d4] sm:$0xf]  ;;  %v1318_v39 = vld [vmem:[#allocation2 + $0x1d8] sm:$0xf0] }
  0xd7   :  { %v985_v45 = vpack.c.bf16 %v921_v43, %v921_v43  ;;  %v890_v46 = vmax.f32 %v740_v44, 0.0  ;;  %v1189_v44 = vor.u32 %v1429_v31, %v1188_v28 }
  0xd8   :  { %v650_v47 = vpop.f32.mrf.mxu2 }
  0xd9   :  { %1050 = vst.msk [vmem:[%s1925_s3 + $0x94] sm:$0xf] %vm1012_vm0, %v985_v45  ;;  %v954_v49 = vpack.c.bf16 %v890_v46, %v890_v46  ;;  %v651_v50 = vadd.f32 %v1606_v48, %v650_v47  ;;  %v819_v51 = vpop.f32.mrf.mxu3  ;;  %v1317_v45 = vor.u32 %v1461_v33, %v1316_v32  ;;  %v1193_v47 = vor.u32 %v1428_v34, %v1190_v35 }
  0xda   :  { %v572_v52 = vpop.f32.mrf.mxu0 }
  0xdb   :  { %1019 = vst.msk [vmem:[%s1925_s3 + $0x18] sm:$0xf] %vm1012_vm0, %v954_v49  ;;  %v820_v53 = vadd.f32 %v819_v51, %v651_v50  ;;  %v573_v54 = vadd.f32 %v1606_v48, %v572_v52  ;;  %v741_v55 = vpop.f32.mrf.mxu1  ;;  %v1321_v49 = vor.u32 %v1460_v38, %v1318_v39 }
  0xdd   :  { %v922_v57 = vmax.f32 %v820_v53, 0.0  ;;  %v742_v58 = vadd.f32 %v741_v55, %v573_v54 }
  0xdf   :  { %v986_v0 = vpack.c.bf16 %v922_v57, %v922_v57  ;;  %v891_v1 = vmax.f32 %v742_v58, 0.0 }
  0xe0   :  { %v652_v4 = vpop.f32.mrf.mxu2 }
  0xe1   :  { %1051 = vst.msk [vmem:[%s1925_s3 + $0x98] sm:$0xf] %vm1012_vm0, %v986_v0  ;;  %v955_v5 = vpack.c.bf16 %v891_v1, %v891_v1  ;;  %v653_v6 = vadd.f32 %v1606_v48, %v652_v4  ;;  %v821_v7 = vpop.f32.mrf.mxu3  ;;  %v1196_v1 = vld [vmem:[#allocation2 + $0xe0] sm:$0xf]  ;;  %v1431_v4 = vld [vmem:[#allocation2 + $0xe4] sm:$0xf0] }
  0xe2   :  { %v575_v10 = vpop.f32.mrf.mxu0 }
  0xe3   :  { %1020 = vst.msk [vmem:[%s1925_s3 + $0x1c] sm:$0xf] %vm1012_vm0, %v955_v5  ;;  %v822_v13 = vadd.f32 %v821_v7, %v653_v6  ;;  %v576_v14 = vadd.f32 %v1606_v48, %v575_v10  ;;  %v744_v15 = vpop.f32.mrf.mxu1  ;;  %v1324_v5 = vld [vmem:[#allocation2 + $0x1e0] sm:$0xf]  ;;  %v1463_v6 = vld [vmem:[#allocation2 + $0x1e4] sm:$0xf0] }
  0xe4   :  { %v1430_v7 = vld [vmem:[#allocation2 + $0xe4] sm:$0xf] }
  0xe5   :  { %v923_v16 = vmax.f32 %v822_v13, 0.0  ;;  %v745_v17 = vadd.f32 %v744_v15, %v576_v14  ;;  %614 = vmatmul.bf16.gmra.mxu0 %v1181_v8  ;;  %694 = vmatmul.bf16.gmra.mxu2 %v1309_v9  ;;  %v1198_v8 = vld [vmem:[#allocation2 + $0xe8] sm:$0xf0] }
  0xe6   :  { %783 = vmatmul.bf16.gmra.mxu1 %v1185_v11  ;;  %863 = vmatmul.bf16.gmra.mxu3 %v1313_v12  ;;  %v1462_v11 = vld [vmem:[#allocation2 + $0x1e4] sm:$0xf]  ;;  %v1326_v12 = vld [vmem:[#allocation2 + $0x1e8] sm:$0xf0] }
  0xe7   :  { %v987_v18 = vpack.c.bf16 %v923_v16, %v923_v16  ;;  %v892_v19 = vmax.f32 %v745_v17, 0.0  ;;  %v1197_v17 = vor.u32 %v1431_v4, %v1196_v1 }
  0xe8   :  { %v655_v20 = vpop.f32.mrf.mxu2 }
  0xe9   :  { %1052 = vst.msk [vmem:[%s1925_s3 + $0x9c] sm:$0xf] %vm1012_vm0, %v987_v18  ;;  %v956_v21 = vpack.c.bf16 %v892_v19, %v892_v19  ;;  %v656_v22 = vadd.f32 %v1606_v48, %v655_v20  ;;  %v824_v23 = vpop.f32.mrf.mxu3  ;;  %v1325_v18 = vor.u32 %v1463_v6, %v1324_v5  ;;  %v1201_v20 = vor.u32 %v1430_v7, %v1198_v8 }
  0xea   :  { %v577_v24 = vpop.f32.mrf.mxu0 }
  0xeb   :  { %1021 = vst.msk [vmem:[%s1925_s3 + $0x20] sm:$0xf] %vm1012_vm0, %v956_v21  ;;  %v825_v25 = vadd.f32 %v824_v23, %v656_v22  ;;  %v578_v26 = vadd.f32 %v1606_v48, %v577_v24  ;;  %v746_v27 = vpop.f32.mrf.mxu1  ;;  %v1329_v21 = vor.u32 %v1462_v11, %v1326_v12 }
  0xed   :  { %v924_v29 = vmax.f32 %v825_v25, 0.0  ;;  %v747_v30 = vadd.f32 %v746_v27, %v578_v26 }
  0xef   :  { %v988_v36 = vpack.c.bf16 %v924_v29, %v924_v29  ;;  %v893_v37 = vmax.f32 %v747_v30, 0.0 }
  0xf0   :  { %v657_v40 = vpop.f32.mrf.mxu2 }
  0xf1   :  { %1053 = vst.msk [vmem:[%s1925_s3 + $0xa0] sm:$0xf] %vm1012_vm0, %v988_v36  ;;  %v957_v41 = vpack.c.bf16 %v893_v37, %v893_v37  ;;  %v658_v42 = vadd.f32 %v1606_v48, %v657_v40  ;;  %v826_v43 = vpop.f32.mrf.mxu3  ;;  %v1204_v37 = vld [vmem:[#allocation2 + $0xf0] sm:$0xf]  ;;  %v1433_v40 = vld [vmem:[#allocation2 + $0xf4] sm:$0xf0] }
  0xf2   :  { %v580_v46 = vpop.f32.mrf.mxu0 }
  0xf3   :  { %1022 = vst.msk [vmem:[%s1925_s3 + $0x24] sm:$0xf] %vm1012_vm0, %v957_v41  ;;  %v827_v50 = vadd.f32 %v826_v43, %v658_v42  ;;  %v581_v51 = vadd.f32 %v1606_v48, %v580_v46  ;;  %v749_v52 = vpop.f32.mrf.mxu1  ;;  %v1332_v41 = vld [vmem:[#allocation2 + $0x1f0] sm:$0xf]  ;;  %v1465_v42 = vld [vmem:[#allocation2 + $0x1f4] sm:$0xf0] }
  0xf4   :  { %v1432_v43 = vld [vmem:[#allocation2 + $0xf4] sm:$0xf] }
  0xf5   :  { %v925_v53 = vmax.f32 %v827_v50, 0.0  ;;  %v750_v54 = vadd.f32 %v749_v52, %v581_v51  ;;  %619 = vmatmul.bf16.gmra.mxu0 %v1189_v44  ;;  %699 = vmatmul.bf16.gmra.mxu2 %v1317_v45  ;;  %v1206_v44 = vld [vmem:[#allocation2 + $0xf8] sm:$0xf0] }
  0xf6   :  { %788 = vmatmul.bf16.gmra.mxu1 %v1193_v47  ;;  %868 = vmatmul.bf16.gmra.mxu3 %v1321_v49  ;;  %v1464_v47 = vld [vmem:[#allocation2 + $0x1f4] sm:$0xf]  ;;  %v1334_v49 = vld [vmem:[#allocation2 + $0x1f8] sm:$0xf0] }
  0xf7   :  { %v989_v55 = vpack.c.bf16 %v925_v53, %v925_v53  ;;  %v894_v56 = vmax.f32 %v750_v54, 0.0  ;;  %v1205_v54 = vor.u32 %v1433_v40, %v1204_v37 }
  0xf8   :  { %v660_v57 = vpop.f32.mrf.mxu2 }
  0xf9   :  { %1054 = vst.msk [vmem:[%s1925_s3 + $0xa4] sm:$0xf] %vm1012_vm0, %v989_v55  ;;  %v958_v58 = vpack.c.bf16 %v894_v56, %v894_v56  ;;  %v661_v59 = vadd.f32 %v1606_v48, %v660_v57  ;;  %v829_v60 = vpop.f32.mrf.mxu3  ;;  %v1333_v55 = vor.u32 %v1465_v42, %v1332_v41  ;;  %v1209_v57 = vor.u32 %v1432_v43, %v1206_v44 }
  0xfa   :  { %v582_v61 = vpop.f32.mrf.mxu0 }
  0xfb   :  { %1023 = vst.msk [vmem:[%s1925_s3 + $0x28] sm:$0xf] %vm1012_vm0, %v958_v58  ;;  %v830_v62 = vadd.f32 %v829_v60, %v661_v59  ;;  %v583_v63 = vadd.f32 %v1606_v48, %v582_v61  ;;  %v751_v0 = vpop.f32.mrf.mxu1  ;;  %v1337_v58 = vor.u32 %v1464_v47, %v1334_v49 }
  0xfd   :  { %v926_v2 = vmax.f32 %v830_v62, 0.0  ;;  %v752_v3 = vadd.f32 %v751_v0, %v583_v63 }
  0xff   :  { %v990_v9 = vpack.c.bf16 %v926_v2, %v926_v2  ;;  %v895_v10 = vmax.f32 %v752_v3, 0.0 }
 0x100   :  { %v662_v13 = vpop.f32.mrf.mxu2 }
 0x101   :  { %1055 = vst.msk [vmem:[%s1925_s3 + $0xa8] sm:$0xf] %vm1012_vm0, %v990_v9  ;;  %v959_v14 = vpack.c.bf16 %v895_v10, %v895_v10  ;;  %v663_v15 = vadd.f32 %v1606_v48, %v662_v13  ;;  %v831_v16 = vpop.f32.mrf.mxu3 }
 0x102   :  { %v585_v19 = vpop.f32.mrf.mxu0 }
 0x103   :  { %1024 = vst.msk [vmem:[%s1925_s3 + $0x2c] sm:$0xf] %vm1012_vm0, %v959_v14  ;;  %v832_v22 = vadd.f32 %v831_v16, %v663_v15  ;;  %v586_v23 = vadd.f32 %v1606_v48, %v585_v19  ;;  %v754_v24 = vpop.f32.mrf.mxu1 }
 0x105   :  { %v927_v25 = vmax.f32 %v832_v22, 0.0  ;;  %v755_v26 = vadd.f32 %v754_v24, %v586_v23  ;;  %624 = vmatmul.bf16.gmra.mxu0 %v1197_v17  ;;  %704 = vmatmul.bf16.gmra.mxu2 %v1325_v18 }
 0x106   :  { %793 = vmatmul.bf16.gmra.mxu1 %v1201_v20  ;;  %873 = vmatmul.bf16.gmra.mxu3 %v1329_v21 }
 0x107   :  { %v991_v27 = vpack.c.bf16 %v927_v25, %v927_v25  ;;  %v896_v28 = vmax.f32 %v755_v26, 0.0 }
 0x108   :  { %v665_v29 = vpop.f32.mrf.mxu2 }
 0x109   :  { %1056 = vst.msk [vmem:[%s1925_s3 + $0xac] sm:$0xf] %vm1012_vm0, %v991_v27  ;;  %v960_v30 = vpack.c.bf16 %v896_v28, %v896_v28  ;;  %v666_v31 = vadd.f32 %v1606_v48, %v665_v29  ;;  %v834_v32 = vpop.f32.mrf.mxu3 }
 0x10a   :  { %v587_v33 = vpop.f32.mrf.mxu0 }
 0x10b   :  { %1025 = vst.msk [vmem:[%s1925_s3 + $0x30] sm:$0xf] %vm1012_vm0, %v960_v30  ;;  %v835_v34 = vadd.f32 %v834_v32, %v666_v31  ;;  %v588_v35 = vadd.f32 %v1606_v48, %v587_v33  ;;  %v756_v36 = vpop.f32.mrf.mxu1 }
 0x10d   :  { %v928_v38 = vmax.f32 %v835_v34, 0.0  ;;  %v757_v39 = vadd.f32 %v756_v36, %v588_v35 }
 0x10f   :  { %v992_v45 = vpack.c.bf16 %v928_v38, %v928_v38  ;;  %v897_v46 = vmax.f32 %v757_v39, 0.0 }
 0x110   :  { %v667_v50 = vpop.f32.mrf.mxu2 }
 0x111   :  { %1057 = vst.msk [vmem:[%s1925_s3 + $0xb0] sm:$0xf] %vm1012_vm0, %v992_v45  ;;  %v961_v51 = vpack.c.bf16 %v897_v46, %v897_v46  ;;  %v668_v52 = vadd.f32 %v1606_v48, %v667_v50  ;;  %v836_v53 = vpop.f32.mrf.mxu3 }
 0x112   :  { %v590_v56 = vpop.f32.mrf.mxu0 }
 0x113   :  { %1026 = vst.msk [vmem:[%s1925_s3 + $0x34] sm:$0xf] %vm1012_vm0, %v961_v51  ;;  %v837_v59 = vadd.f32 %v836_v53, %v668_v52  ;;  %v591_v60 = vadd.f32 %v1606_v48, %v590_v56  ;;  %v759_v61 = vpop.f32.mrf.mxu1 }
 0x115   :  { %v929_v62 = vmax.f32 %v837_v59, 0.0  ;;  %v760_v63 = vadd.f32 %v759_v61, %v591_v60  ;;  %629 = vmatmul.bf16.gmra.mxu0 %v1205_v54  ;;  %709 = vmatmul.bf16.gmra.mxu2 %v1333_v55 }
 0x116   :  { %798 = vmatmul.bf16.gmra.mxu1 %v1209_v57  ;;  %878 = vmatmul.bf16.gmra.mxu3 %v1337_v58 }
 0x117   :  { %v993_v0 = vpack.c.bf16 %v929_v62, %v929_v62  ;;  %v898_v1 = vmax.f32 %v760_v63, 0.0 }
 0x118   :  { %v670_v2 = vpop.f32.mrf.mxu2 }
 0x119   :  { %1058 = vst.msk [vmem:[%s1925_s3 + $0xb4] sm:$0xf] %vm1012_vm0, %v993_v0  ;;  %v962_v3 = vpack.c.bf16 %v898_v1, %v898_v1  ;;  %v671_v4 = vadd.f32 %v1606_v48, %v670_v2  ;;  %v839_v5 = vpop.f32.mrf.mxu3 }
 0x11a   :  { %v592_v6 = vpop.f32.mrf.mxu0 }
 0x11b   :  { %1027 = vst.msk [vmem:[%s1925_s3 + $0x38] sm:$0xf] %vm1012_vm0, %v962_v3  ;;  %v840_v7 = vadd.f32 %v839_v5, %v671_v4  ;;  %v593_v8 = vadd.f32 %v1606_v48, %v592_v6  ;;  %v761_v9 = vpop.f32.mrf.mxu1 }
 0x11d   :  { %v930_v10 = vmax.f32 %v840_v7, 0.0  ;;  %v762_v11 = vadd.f32 %v761_v9, %v593_v8 }
 0x11f   :  { %v994_v12 = vpack.c.bf16 %v930_v10, %v930_v10  ;;  %v899_v13 = vmax.f32 %v762_v11, 0.0 }
 0x120   :  { %v672_v14 = vpop.f32.mrf.mxu2 }
 0x121   :  { %1059 = vst.msk [vmem:[%s1925_s3 + $0xb8] sm:$0xf] %vm1012_vm0, %v994_v12  ;;  %v963_v15 = vpack.c.bf16 %v899_v13, %v899_v13  ;;  %v673_v16 = vadd.f32 %v1606_v48, %v672_v14  ;;  %v841_v17 = vpop.f32.mrf.mxu3 }
 0x122   :  { %v595_v18 = vpop.f32.mrf.mxu0 }
 0x123   :  { %1028 = vst.msk [vmem:[%s1925_s3 + $0x3c] sm:$0xf] %vm1012_vm0, %v963_v15  ;;  %v842_v19 = vadd.f32 %v841_v17, %v673_v16  ;;  %v596_v20 = vadd.f32 %v1606_v48, %v595_v18  ;;  %v764_v21 = vpop.f32.mrf.mxu1 }
 0x125   :  { %v931_v22 = vmax.f32 %v842_v19, 0.0  ;;  %v765_v23 = vadd.f32 %v764_v21, %v596_v20 }
 0x127   :  { %v995_v24 = vpack.c.bf16 %v931_v22, %v931_v22  ;;  %v900_v25 = vmax.f32 %v765_v23, 0.0 }
 0x128   :  { %v675_v26 = vpop.f32.mrf.mxu2 }
 0x129   :  { %1060 = vst.msk [vmem:[%s1925_s3 + $0xbc] sm:$0xf] %vm1012_vm0, %v995_v24  ;;  %v964_v27 = vpack.c.bf16 %v900_v25, %v900_v25  ;;  %v676_v28 = vadd.f32 %v1606_v48, %v675_v26  ;;  %v844_v29 = vpop.f32.mrf.mxu3 }
 0x12a   :  { %v597_v30 = vpop.f32.mrf.mxu0 }
 0x12b   :  { %1029 = vst.msk [vmem:[%s1925_s3 + $0x40] sm:$0xf] %vm1012_vm0, %v964_v27  ;;  %v845_v31 = vadd.f32 %v844_v29, %v676_v28  ;;  %v598_v32 = vadd.f32 %v1606_v48, %v597_v30  ;;  %v766_v33 = vpop.f32.mrf.mxu1 }
 0x12d   :  { %v932_v34 = vmax.f32 %v845_v31, 0.0  ;;  %v767_v35 = vadd.f32 %v766_v33, %v598_v32 }
 0x12f   :  { %v996_v36 = vpack.c.bf16 %v932_v34, %v932_v34  ;;  %v901_v37 = vmax.f32 %v767_v35, 0.0 }
 0x130   :  { %v677_v38 = vpop.f32.mrf.mxu2 }
 0x131   :  { %1061 = vst.msk [vmem:[%s1925_s3 + $0xc0] sm:$0xf] %vm1012_vm0, %v996_v36  ;;  %v965_v39 = vpack.c.bf16 %v901_v37, %v901_v37  ;;  %v678_v40 = vadd.f32 %v1606_v48, %v677_v38  ;;  %v846_v41 = vpop.f32.mrf.mxu3 }
 0x132   :  { %v600_v42 = vpop.f32.mrf.mxu0 }
 0x133   :  { %1030 = vst.msk [vmem:[%s1925_s3 + $0x44] sm:$0xf] %vm1012_vm0, %v965_v39  ;;  %v847_v43 = vadd.f32 %v846_v41, %v678_v40  ;;  %v601_v44 = vadd.f32 %v1606_v48, %v600_v42  ;;  %v769_v45 = vpop.f32.mrf.mxu1 }
 0x135   :  { %v933_v46 = vmax.f32 %v847_v43, 0.0  ;;  %v770_v47 = vadd.f32 %v769_v45, %v601_v44 }
 0x137   :  { %v997_v49 = vpack.c.bf16 %v933_v46, %v933_v46  ;;  %v902_v50 = vmax.f32 %v770_v47, 0.0 }
 0x138   :  { %v680_v51 = vpop.f32.mrf.mxu2 }
 0x139   :  { %1062 = vst.msk [vmem:[%s1925_s3 + $0xc4] sm:$0xf] %vm1012_vm0, %v997_v49  ;;  %v966_v52 = vpack.c.bf16 %v902_v50, %v902_v50  ;;  %v681_v53 = vadd.f32 %v1606_v48, %v680_v51  ;;  %v849_v54 = vpop.f32.mrf.mxu3 }
 0x13a   :  { %v602_v55 = vpop.f32.mrf.mxu0 }
 0x13b   :  { %1031 = vst.msk [vmem:[%s1925_s3 + $0x48] sm:$0xf] %vm1012_vm0, %v966_v52  ;;  %v850_v56 = vadd.f32 %v849_v54, %v681_v53  ;;  %v603_v57 = vadd.f32 %v1606_v48, %v602_v55  ;;  %v771_v58 = vpop.f32.mrf.mxu1 }
 0x13d   :  { %v934_v59 = vmax.f32 %v850_v56, 0.0  ;;  %v772_v60 = vadd.f32 %v771_v58, %v603_v57 }
 0x13f   :  { %v998_v61 = vpack.c.bf16 %v934_v59, %v934_v59  ;;  %v903_v62 = vmax.f32 %v772_v60, 0.0 }
 0x140   :  { %v682_v63 = vpop.f32.mrf.mxu2 }
 0x141   :  { %1063 = vst.msk [vmem:[%s1925_s3 + $0xc8] sm:$0xf] %vm1012_vm0, %v998_v61  ;;  %v967_v0 = vpack.c.bf16 %v903_v62, %v903_v62  ;;  %v683_v1 = vadd.f32 %v1606_v48, %v682_v63  ;;  %v851_v2 = vpop.f32.mrf.mxu3 }
 0x142   :  { %v605_v3 = vpop.f32.mrf.mxu0 }
 0x143   :  { %1032 = vst.msk [vmem:[%s1925_s3 + $0x4c] sm:$0xf] %vm1012_vm0, %v967_v0  ;;  %v852_v4 = vadd.f32 %v851_v2, %v683_v1  ;;  %v606_v5 = vadd.f32 %v1606_v48, %v605_v3  ;;  %v774_v6 = vpop.f32.mrf.mxu1 }
 0x145   :  { %v935_v7 = vmax.f32 %v852_v4, 0.0  ;;  %v775_v8 = vadd.f32 %v774_v6, %v606_v5 }
 0x147   :  { %v999_v9 = vpack.c.bf16 %v935_v7, %v935_v7  ;;  %v904_v10 = vmax.f32 %v775_v8, 0.0 }
 0x148   :  { %v685_v11 = vpop.f32.mrf.mxu2 }
 0x149   :  { %1064 = vst.msk [vmem:[%s1925_s3 + $0xcc] sm:$0xf] %vm1012_vm0, %v999_v9  ;;  %v968_v12 = vpack.c.bf16 %v904_v10, %v904_v10  ;;  %v686_v13 = vadd.f32 %v1606_v48, %v685_v11  ;;  %v854_v14 = vpop.f32.mrf.mxu3 }
 0x14a   :  { %v607_v15 = vpop.f32.mrf.mxu0 }
 0x14b   :  { %1033 = vst.msk [vmem:[%s1925_s3 + $0x50] sm:$0xf] %vm1012_vm0, %v968_v12  ;;  %v855_v16 = vadd.f32 %v854_v14, %v686_v13  ;;  %v608_v17 = vadd.f32 %v1606_v48, %v607_v15  ;;  %v776_v18 = vpop.f32.mrf.mxu1 }
 0x14d   :  { %v936_v19 = vmax.f32 %v855_v16, 0.0  ;;  %v777_v20 = vadd.f32 %v776_v18, %v608_v17 }
 0x14f   :  { %v1000_v21 = vpack.c.bf16 %v936_v19, %v936_v19  ;;  %v905_v22 = vmax.f32 %v777_v20, 0.0 }
 0x150   :  { %v687_v23 = vpop.f32.mrf.mxu2 }
 0x151   :  { %1065 = vst.msk [vmem:[%s1925_s3 + $0xd0] sm:$0xf] %vm1012_vm0, %v1000_v21  ;;  %v969_v24 = vpack.c.bf16 %v905_v22, %v905_v22  ;;  %v688_v25 = vadd.f32 %v1606_v48, %v687_v23  ;;  %v856_v26 = vpop.f32.mrf.mxu3 }
 0x152   :  { %v610_v27 = vpop.f32.mrf.mxu0 }
 0x153   :  { %1034 = vst.msk [vmem:[%s1925_s3 + $0x54] sm:$0xf] %vm1012_vm0, %v969_v24  ;;  %v857_v28 = vadd.f32 %v856_v26, %v688_v25  ;;  %v611_v29 = vadd.f32 %v1606_v48, %v610_v27  ;;  %v779_v30 = vpop.f32.mrf.mxu1 }
 0x155   :  { %v937_v31 = vmax.f32 %v857_v28, 0.0  ;;  %v780_v32 = vadd.f32 %v779_v30, %v611_v29 }
 0x157   :  { %v1001_v33 = vpack.c.bf16 %v937_v31, %v937_v31  ;;  %v906_v34 = vmax.f32 %v780_v32, 0.0 }
 0x158   :  { %v690_v35 = vpop.f32.mrf.mxu2 }
 0x159   :  { %1066 = vst.msk [vmem:[%s1925_s3 + $0xd4] sm:$0xf] %vm1012_vm0, %v1001_v33  ;;  %v970_v36 = vpack.c.bf16 %v906_v34, %v906_v34  ;;  %v691_v37 = vadd.f32 %v1606_v48, %v690_v35  ;;  %v859_v38 = vpop.f32.mrf.mxu3  ;;  %v1502_v34 = vld [vmem:[%s1924_s2] ss:$0 sm:$0xff] }
 0x15a   :  { %v612_v39 = vpop.f32.mrf.mxu0 }
 0x15b   :  { %1035 = vst.msk [vmem:[%s1925_s3 + $0x58] sm:$0xf] %vm1012_vm0, %v970_v36  ;;  %v860_v40 = vadd.f32 %v859_v38, %v691_v37  ;;  %v613_v41 = vadd.f32 %v1606_v48, %v612_v39  ;;  %v781_v42 = vpop.f32.mrf.mxu1 }
 0x15d   :  { %v938_v43 = vmax.f32 %v860_v40, 0.0  ;;  %v782_v44 = vadd.f32 %v781_v42, %v613_v41 }
 0x15f   :  { %v1002_v45 = vpack.c.bf16 %v938_v43, %v938_v43  ;;  %v907_v46 = vmax.f32 %v782_v44, 0.0 }
 0x160   :  { %v692_v47 = vpop.f32.mrf.mxu2 }
 0x161   :  { %1067 = vst.msk [vmem:[%s1925_s3 + $0xd8] sm:$0xf] %vm1012_vm0, %v1002_v45  ;;  %v971_v49 = vpack.c.bf16 %v907_v46, %v907_v46  ;;  %v693_v50 = vadd.f32 %v1606_v48, %v692_v47  ;;  %v861_v51 = vpop.f32.mrf.mxu3 }
 0x162   :  { %v615_v52 = vpop.f32.mrf.mxu0 }
 0x163   :  { %1036 = vst.msk [vmem:[%s1925_s3 + $0x5c] sm:$0xf] %vm1012_vm0, %v971_v49  ;;  %v862_v53 = vadd.f32 %v861_v51, %v693_v50  ;;  %v616_v54 = vadd.f32 %v1606_v48, %v615_v52  ;;  %v784_v55 = vpop.f32.mrf.mxu1 }
 0x165   :  { %v939_v56 = vmax.f32 %v862_v53, 0.0  ;;  %v785_v57 = vadd.f32 %v784_v55, %v616_v54 }
 0x167   :  { %v1003_v58 = vpack.c.bf16 %v939_v56, %v939_v56  ;;  %v908_v59 = vmax.f32 %v785_v57, 0.0 }
 0x168   :  { %v695_v60 = vpop.f32.mrf.mxu2 }
 0x169   :  { %1068 = vst.msk [vmem:[%s1925_s3 + $0xdc] sm:$0xf] %vm1012_vm0, %v1003_v58  ;;  %v972_v61 = vpack.c.bf16 %v908_v59, %v908_v59  ;;  %v696_v62 = vadd.f32 %v1606_v48, %v695_v60  ;;  %v864_v63 = vpop.f32.mrf.mxu3 }
 0x16a   :  { %v617_v0 = vpop.f32.mrf.mxu0 }
 0x16b   :  { %1037 = vst.msk [vmem:[%s1925_s3 + $0x60] sm:$0xf] %vm1012_vm0, %v972_v61  ;;  %v865_v1 = vadd.f32 %v864_v63, %v696_v62  ;;  %v618_v2 = vadd.f32 %v1606_v48, %v617_v0  ;;  %v786_v3 = vpop.f32.mrf.mxu1 }
 0x16d   :  { %v940_v4 = vmax.f32 %v865_v1, 0.0  ;;  %v787_v5 = vadd.f32 %v786_v3, %v618_v2 }
 0x16f   :  { %v1004_v6 = vpack.c.bf16 %v940_v4, %v940_v4  ;;  %v909_v7 = vmax.f32 %v787_v5, 0.0 }
 0x170   :  { %v697_v8 = vpop.f32.mrf.mxu2 }
 0x171   :  { %1069 = vst.msk [vmem:[%s1925_s3 + $0xe0] sm:$0xf] %vm1012_vm0, %v1004_v6  ;;  %v973_v9 = vpack.c.bf16 %v909_v7, %v909_v7  ;;  %v698_v10 = vadd.f32 %v1606_v48, %v697_v8  ;;  %v866_v11 = vpop.f32.mrf.mxu3 }
 0x172   :  { %v620_v12 = vpop.f32.mrf.mxu0 }
 0x173   :  { %1038 = vst.msk [vmem:[%s1925_s3 + $0x64] sm:$0xf] %vm1012_vm0, %v973_v9  ;;  %v867_v13 = vadd.f32 %v866_v11, %v698_v10  ;;  %v621_v14 = vadd.f32 %v1606_v48, %v620_v12  ;;  %v789_v15 = vpop.f32.mrf.mxu1 }
 0x175   :  { %v941_v16 = vmax.f32 %v867_v13, 0.0  ;;  %v790_v17 = vadd.f32 %v789_v15, %v621_v14 }
 0x177   :  { %v1005_v18 = vpack.c.bf16 %v941_v16, %v941_v16  ;;  %v910_v19 = vmax.f32 %v790_v17, 0.0 }
 0x178   :  { %v700_v20 = vpop.f32.mrf.mxu2 }
 0x179   :  { %1070 = vst.msk [vmem:[%s1925_s3 + $0xe4] sm:$0xf] %vm1012_vm0, %v1005_v18  ;;  %v974_v21 = vpack.c.bf16 %v910_v19, %v910_v19  ;;  %v701_v22 = vadd.f32 %v1606_v48, %v700_v20  ;;  %v869_v23 = vpop.f32.mrf.mxu3 }
 0x17a   :  { %v622_v24 = vpop.f32.mrf.mxu0 }
 0x17b   :  { %1039 = vst.msk [vmem:[%s1925_s3 + $0x68] sm:$0xf] %vm1012_vm0, %v974_v21  ;;  %v870_v25 = vadd.f32 %v869_v23, %v701_v22  ;;  %v623_v26 = vadd.f32 %v1606_v48, %v622_v24  ;;  %v791_v27 = vpop.f32.mrf.mxu1 }
 0x17d   :  { %v942_v28 = vmax.f32 %v870_v25, 0.0  ;;  %v792_v29 = vadd.f32 %v791_v27, %v623_v26 }
 0x17f   :  { %v1006_v30 = vpack.c.bf16 %v942_v28, %v942_v28  ;;  %v911_v31 = vmax.f32 %v792_v29, 0.0 }
 0x180   :  { %v702_v32 = vpop.f32.mrf.mxu2 }
 0x181   :  { %1071 = vst.msk [vmem:[%s1925_s3 + $0xe8] sm:$0xf] %vm1012_vm0, %v1006_v30  ;;  %v975_v33 = vpack.c.bf16 %v911_v31, %v911_v31  ;;  %v703_v35 = vadd.f32 %v1502_v34, %v702_v32  ;;  %v871_v36 = vpop.f32.mrf.mxu3 }
 0x182   :  { %v625_v37 = vpop.f32.mrf.mxu0 }
 0x183   :  { %1040 = vst.msk [vmem:[%s1925_s3 + $0x6c] sm:$0xf] %vm1012_vm0, %v975_v33  ;;  %v872_v48 = vadd.f32 %v871_v36, %v703_v35  ;;  %v626_v38 = vadd.f32 %v1502_v34, %v625_v37  ;;  %v794_v39 = vpop.f32.mrf.mxu1 }
 0x185   :  { %v943_v40 = vmax.f32 %v872_v48, 0.0  ;;  %v795_v41 = vadd.f32 %v794_v39, %v626_v38 }
 0x187   :  { %v1007_v42 = vpack.c.bf16 %v943_v40, %v943_v40  ;;  %v912_v43 = vmax.f32 %v795_v41, 0.0 }
 0x188   :  { %v705_v44 = vpop.f32.mrf.mxu2 }
 0x189   :  { %1072 = vst.msk [vmem:[%s1925_s3 + $0xec] sm:$0xf] %vm1012_vm0, %v1007_v42  ;;  %v976_v45 = vpack.c.bf16 %v912_v43, %v912_v43  ;;  %v706_v46 = vadd.f32 %v1502_v34, %v705_v44  ;;  %v874_v47 = vpop.f32.mrf.mxu3 }
 0x18a   :  { %v627_v49 = vpop.f32.mrf.mxu0 }
 0x18b   :  { %1041 = vst.msk [vmem:[%s1925_s3 + $0x70] sm:$0xf] %vm1012_vm0, %v976_v45  ;;  %v875_v50 = vadd.f32 %v874_v47, %v706_v46  ;;  %v628_v51 = vadd.f32 %v1502_v34, %v627_v49  ;;  %v796_v52 = vpop.f32.mrf.mxu1 }
 0x18d   :  { %v944_v53 = vmax.f32 %v875_v50, 0.0  ;;  %v797_v54 = vadd.f32 %v796_v52, %v628_v51 }
 0x18f   :  { %v1008_v55 = vpack.c.bf16 %v944_v53, %v944_v53  ;;  %v913_v56 = vmax.f32 %v797_v54, 0.0 }
 0x190   :  { %v707_v57 = vpop.f32.mrf.mxu2 }
 0x191   :  { %1073 = vst.msk [vmem:[%s1925_s3 + $0xf0] sm:$0xf] %vm1012_vm0, %v1008_v55  ;;  %v977_v58 = vpack.c.bf16 %v913_v56, %v913_v56  ;;  %v708_v59 = vadd.f32 %v1502_v34, %v707_v57  ;;  %v876_v60 = vpop.f32.mrf.mxu3 }
 0x192   :  { %v630_v61 = vpop.f32.mrf.mxu0 }
 0x193   :  { %1042 = vst.msk [vmem:[%s1925_s3 + $0x74] sm:$0xf] %vm1012_vm0, %v977_v58  ;;  %v877_v62 = vadd.f32 %v876_v60, %v708_v59  ;;  %v631_v63 = vadd.f32 %v1502_v34, %v630_v61  ;;  %v799_v0 = vpop.f32.mrf.mxu1 }
 0x195   :  { %v945_v1 = vmax.f32 %v877_v62, 0.0  ;;  %v800_v2 = vadd.f32 %v799_v0, %v631_v63 }
 0x197   :  { %v1009_v3 = vpack.c.bf16 %v945_v1, %v945_v1  ;;  %v914_v4 = vmax.f32 %v800_v2, 0.0 }
 0x198   :  { %v710_v5 = vpop.f32.mrf.mxu2 }
 0x199   :  { %1074 = vst.msk [vmem:[%s1925_s3 + $0xf4] sm:$0xf] %vm1012_vm0, %v1009_v3  ;;  %v978_v6 = vpack.c.bf16 %v914_v4, %v914_v4  ;;  %v711_v7 = vadd.f32 %v1502_v34, %v710_v5  ;;  %v879_v8 = vpop.f32.mrf.mxu3 }
 0x19a   :  { %v632_v9 = vpop.f32.mrf.mxu0 }
 0x19b   :  { %1043 = vst.msk [vmem:[%s1925_s3 + $0x78] sm:$0xf] %vm1012_vm0, %v978_v6  ;;  %v880_v10 = vadd.f32 %v879_v8, %v711_v7  ;;  %v633_v11 = vadd.f32 %v1502_v34, %v632_v9  ;;  %v801_v12 = vpop.f32.mrf.mxu1 }
 0x19d   :  { %v946_v13 = vmax.f32 %v880_v10, 0.0  ;;  %v802_v14 = vadd.f32 %v801_v12, %v633_v11 }
 0x19f   :  { %v1010_v15 = vpack.c.bf16 %v946_v13, %v946_v13  ;;  %v915_v16 = vmax.f32 %v802_v14, 0.0 }
 0x1a0   :  { %v712_v17 = vpop.f32.mrf.mxu2 }
 0x1a1   :  { %1075 = vst.msk [vmem:[%s1925_s3 + $0xf8] sm:$0xf] %vm1012_vm0, %v1010_v15  ;;  %v979_v18 = vpack.c.bf16 %v915_v16, %v915_v16  ;;  %v713_v19 = vadd.f32 %v1502_v34, %v712_v17  ;;  %v881_v20 = vpop.f32.mrf.mxu3 }
 0x1a3   :  { %1044 = vst.msk [vmem:[%s1925_s3 + $0x7c] sm:$0xf] %vm1012_vm0, %v979_v18  ;;  %v882_v21 = vadd.f32 %v881_v20, %v713_v19 }
 0x1a5   :  { %v947_v22 = vmax.f32 %v882_v21, 0.0 }
 0x1a7   :  { %v1011_v23 = vpack.c.bf16 %v947_v22, %v947_v22 }
 0x1a9   :  { %1076 = vst.msk [vmem:[%s1925_s3 + $0xfc] sm:$0xf] %vm1012_vm0, %v1011_v23 }
 0x1aa   :  { %1081 = vsyncpa [#allocation3], 1 }

</bundles_post_ra>
